<compile_context>
chip_gen: v7x
topology: tpu7x:2x2x1
jax: 0.10.0
libtpu: 0.0.40
codegen_flags: <defaults>
</compile_context>

<pallas_src>
import math

import numpy as np
import jax
import jax.numpy as jnp
from jax.experimental import pallas as pl
from jax.experimental.pallas import tpu as pltpu


# --------------------------------------------------------------------------- #
# Kernels
# --------------------------------------------------------------------------- #
def _repeat_trunc_kernel(w_ref, coefs_ref, bias_ref, wp_ref):
    # w_ref:     (tb, D)     dense latent rows (lane-dense, no sublane padding)
    # coefs_ref: (L, D)      per-layer scale (grid-resident: constant block idx)
    # bias_ref:  (L, D)      per-layer bias  w_avg * (1 - coefs)
    # wp_ref:    (tb, L, D)  layer-wise style codes
    w = w_ref[...]                                   # (tb, D)
    c = coefs_ref[...][None, :, :]                   # (1, L, D)
    b = bias_ref[...][None, :, :]                    # (1, L, D)
    # Layer repeat fused as an in-VMEM sublane broadcast (rides the XLU slot).
    wp_ref[...] = (w[:, None, :] * c + b).astype(wp_ref.dtype)


def _rows_trunc_kernel(w_ref, coefs_ref, bias_ref, wp_ref):
    # All blocks (tbr, D): flattened (N*L, D) rows, lane- and sublane-dense.
    wp_ref[...] = (w_ref[...] * coefs_ref[...] + bias_ref[...]).astype(wp_ref.dtype)


# --------------------------------------------------------------------------- #
# Tile sizing helpers (account for what is actually allocated in VMEM)
# --------------------------------------------------------------------------- #
def _sublane(itemsize):
    # minimum sublane tile: f32 -> 8, bf16 -> 16, 8-bit -> 32
    return max(8, 32 // max(int(itemsize), 1))


def _round_up(x, m):
    return ((x + m - 1) // m) * m


def _lcm(a, b):
    return a * b // math.gcd(a, b)


def _vmem_capacity_bytes():
    try:
        return int(pltpu.get_tpu_info().vmem_capacity_bytes)
    except Exception:
        return 64 << 20  # conservative fallback (v7x per-TC VMEM)


def _vmem_budget():
    """(tile_budget_bytes, vmem_limit_bytes) sized per TPU generation."""
    cap = _vmem_capacity_bytes()
    if cap >= (96 << 20):          # v5e / v6e: 128 MiB physical VMEM
        tile_budget = 48 << 20
    else:                          # v7x: 64 MiB per TensorCore
        tile_budget = 28 << 20
    vmem_limit = min(cap - (4 << 20), tile_budget + (12 << 20))
    return tile_budget, int(vmem_limit)


def _pick_tb_repeat(n, L, D, w_itemsize, out_itemsize, c_itemsize, budget):
    """Batch-rows per grid step for the fused-repeat path."""
    sub_in = _sublane(w_itemsize)
    L_pad_out = _round_up(L, _sublane(out_itemsize))
    L_pad_c = _round_up(L, _sublane(c_itemsize))
    # double-buffered output (tb, L_pad, D) + double-buffered input (tb, D)
    per_row = 2 * (L_pad_out * D * out_itemsize + D * w_itemsize)
    # grid-resident coefs + bias, double-buffered
    const = 4 * L_pad_c * D * c_itemsize
    tb = max(1, (budget - const) // per_row)
    tb = min(tb, (n + 1) // 2)        # >= 2 grid steps when possible (v7x 2-TC)
    tb = (tb // sub_in) * sub_in      # sublane-aligned dense input blocks
    if tb < sub_in:
        tb = min(n, sub_in)           # tiny batch: full-extent block (legal)
    return int(min(tb, n))


def _pick_tbr_rows(rows, L, D, w_itemsize, c_itemsize, budget):
    """Flattened rows per grid step for the layer-wise path (multiple of L)."""
    unit = _lcm(L, max(_sublane(w_itemsize), _sublane(c_itemsize)))
    # in + out + coefs + bias, all (tbr, D), all double-buffered
    per_row = 4 * D * w_itemsize + 4 * D * c_itemsize
    tbr = max(1, budget // per_row)
    tbr = min(tbr, (rows + 1) // 2)   # >= 2 grid steps when possible
    tbr = (tbr // unit) * unit        # multiple of L (coefs pattern) and sublane
    if tbr < unit:
        tbr = min(rows, unit)         # rows is a multiple of L, so still valid
    return int(min(tbr, rows))


# --------------------------------------------------------------------------- #
# Forward
# --------------------------------------------------------------------------- #
def truncation_forward(w, w_avg, *, num_layers, w_space_dim, repeat_w=True,
                       trunc_psi=None, trunc_layers=None, donate_w=False):
    """Pallas TruncationModuleForV6.forward. Returns wp of shape (N, L, D)."""
    L, D = int(num_layers), int(w_space_dim)
    psi = 1.0 if trunc_psi is None else float(trunc_psi)
    layers = 0 if trunc_layers is None else int(trunc_layers)
    apply_trunc = (psi < 1.0) and (layers > 0)

    # ---- normalize the input latent (mirrors the PyTorch view/repeat logic) ----
    fused_repeat = False
    if w.ndim == 2:
        if repeat_w and w.shape[1] == D:
            w_flat = w                       # (N, D); repeat fused in-kernel
            fused_repeat = True
        else:
            assert w.shape[1] == L * D
            w_lw = w.reshape(-1, L, D)
    else:
        assert w.ndim == 3 and w.shape[1:] == (L, D)
        w_lw = w

    # ---- identity fast path: layer-wise input + truncation disabled ----------
    if not fused_repeat and not apply_trunc:
        return w_lw                          # exact passthrough, no HBM round-trip

    # Lane-dense fast path (keeps every store an unmasked full-lane vst).
    assert D % 128 == 0, "w_space_dim must be a multiple of 128 (lane width)"

    # ---- tiny (L, D) affine constants: wp = w * coefs + bias -----------------
    compute_dtype = jnp.bfloat16 if w.dtype == jnp.bfloat16 else jnp.float32
    coefs_col = np.ones((L, 1), np.float32)
    if apply_trunc:
        coefs_col[:layers] = psi
    coefs_ld = jnp.asarray(np.tile(coefs_col, (1, D)), dtype=compute_dtype)
    if apply_trunc:
        w_avg_ld = jnp.broadcast_to(
            jnp.reshape(w_avg.astype(jnp.float32), (-1, D)), (L, D))
        bias_ld = (w_avg_ld * (1.0 - jnp.asarray(coefs_col))).astype(compute_dtype)
    else:
        bias_ld = jnp.zeros((L, D), compute_dtype)   # coefs==1, bias==0 -> exact w

    tile_budget, vmem_limit = _vmem_budget()
    w_isz = jnp.dtype(w.dtype).itemsize
    c_isz = jnp.dtype(compute_dtype).itemsize
    cparams = pltpu.CompilerParams(
        dimension_semantics=("parallel",),
        vmem_limit_bytes=int(vmem_limit))

    if fused_repeat:
        # ---- Path A: (N, D) latent, layer repeat fused into the kernel -------
        N = int(w_flat.shape[0])
        tb = _pick_tb_repeat(N, L, D, w_isz, w_isz, c_isz, tile_budget)
        wp = pl.pallas_call(
            _repeat_trunc_kernel,
            out_shape=jax.ShapeDtypeStruct((N, L, D), w.dtype),
            grid=(pl.cdiv(N, tb),),
            in_specs=[
                pl.BlockSpec((tb, D), lambda b: (b, 0)),
                pl.BlockSpec((L, D), lambda b: (0, 0)),
                pl.BlockSpec((L, D), lambda b: (0, 0)),
            ],
            out_specs=pl.BlockSpec((tb, L, D), lambda b: (b, 0, 0)),
            compiler_params=cparams,
        )(w_flat, coefs_ld, bias_ld)
        return wp

    # ---- Path B: already layer-wise -> flatten to (N*L, D) dense rows --------
    N = int(w_lw.shape[0])
    rows = N * L
    w_rows = w_lw.reshape(rows, D)
    tbr = _pick_tbr_rows(rows, L, D, w_isz, c_isz, tile_budget)
    reps = tbr // L
    coefs_rows = jnp.tile(coefs_ld, (reps, 1))       # (tbr, D), grid-resident
    bias_rows = jnp.tile(bias_ld, (reps, 1))         # (tbr, D), grid-resident
    out_rows = pl.pallas_call(
        _rows_trunc_kernel,
        out_shape=jax.ShapeDtypeStruct((rows, D), w.dtype),
        grid=(pl.cdiv(rows, tbr),),
        in_specs=[
            pl.BlockSpec((tbr, D), lambda b: (b, 0)),
            pl.BlockSpec((tbr, D), lambda b: (0, 0)),
            pl.BlockSpec((tbr, D), lambda b: (0, 0)),
        ],
        out_specs=pl.BlockSpec((tbr, D), lambda b: (b, 0)),
        compiler_params=cparams,
        input_output_aliases=({0: 0} if donate_w else {}),
    )(w_rows, coefs_rows, bias_rows)
    return out_rows.reshape(N, L, D)


# --------------------------------------------------------------------------- #
# Pure-JAX reference (mirror of the PyTorch forward)
# --------------------------------------------------------------------------- #
def truncation_reference(w, w_avg, *, num_layers, w_space_dim, repeat_w=True,
                         trunc_psi=None, trunc_layers=None):
    L, D = num_layers, w_space_dim
    if w.ndim == 2:
        if repeat_w and w.shape[1] == D:
            wp = jnp.tile(w.reshape(-1, 1, D), (1, L, 1))
        else:
            assert w.shape[1] == L * D
            wp = w.reshape(-1, L, D)
    else:
        wp = w
    assert wp.ndim == 3 and wp.shape[1:] == (L, D)
    psi = 1.0 if trunc_psi is None else trunc_psi
    layers = 0 if trunc_layers is None else trunc_layers
    if psi < 1.0 and layers > 0:
        layer_idx = np.arange(L).reshape(1, -1, 1)
        coefs = np.ones_like(layer_idx, dtype=np.float32)
        coefs[layer_idx < layers] *= psi
        w_avg_r = w_avg.reshape(1, -1, D)
        wp = w_avg_r + (wp - w_avg_r) * jnp.asarray(coefs)
    return wp


# --------------------------------------------------------------------------- #
# Self-test
# --------------------------------------------------------------------------- #
if __name__ == "__main__":
    key = jax.random.PRNGKey(0)
    k1, k2, k3 = jax.random.split(key, 3)
    L, D = 8, 128
    w_avg = 0.1 * jax.random.normal(k2, (D,), jnp.float32)

    # 1) fused layer repeat + truncation (2-D latent, repeat_w=True), batch=2.
    w2d = jax.random.normal(k1, (2, D), jnp.float32)
    wp = jax.block_until_ready(
        truncation_forward(w2d, w_avg, num_layers=L, w_space_dim=D,
                           repeat_w=True, trunc_psi=0.7, trunc_layers=4))
    ref = truncation_reference(w2d, w_avg, num_layers=L, w_space_dim=D,
                               repeat_w=True, trunc_psi=0.7, trunc_layers=4)
    assert wp.shape == (2, L, D)
    np.testing.assert_allclose(np.asarray(wp), np.asarray(ref),
                               rtol=1e-5, atol=1e-6)

    # 2) truncation disabled -> exact layer-wise repeat through the kernel.
    wp2 = jax.block_until_ready(
        truncation_forward(w2d, w_avg, num_layers=L, w_space_dim=D))
    ref2 = truncation_reference(w2d, w_avg, num_layers=L, w_space_dim=D)
    np.testing.assert_allclose(np.asarray(wp2), np.asarray(ref2),
                               rtol=0.0, atol=0.0)

    # 3) already layer-wise 3-D latent (flattened-rows path), odd batch,
    #    donated input (input_output_aliases).
    w3d = jax.random.normal(k3, (3, L, D), jnp.float32)
    ref3 = truncation_reference(w3d, w_avg, num_layers=L, w_space_dim=D,
                                trunc_psi=0.5, trunc_layers=L)
    wp3 = jax.block_until_ready(
        truncation_forward(w3d, w_avg, num_layers=L, w_space_dim=D,
                           trunc_psi=0.5, trunc_layers=L, donate_w=True))
    np.testing.assert_allclose(np.asarray(wp3), np.asarray(ref3),
                               rtol=1e-5, atol=1e-6)

    # 4) ragged cdiv grid on the fused-repeat path (N=20 -> 8-row blocks + tail).
    w_big = jax.random.normal(jax.random.PRNGKey(4), (20, D), jnp.float32)
    wp4 = jax.block_until_ready(
        truncation_forward(w_big, w_avg, num_layers=L, w_space_dim=D,
                           repeat_w=True, trunc_psi=0.7, trunc_layers=6))
    ref4 = truncation_reference(w_big, w_avg, num_layers=L, w_space_dim=D,
                                repeat_w=True, trunc_psi=0.7, trunc_layers=6)
    np.testing.assert_allclose(np.asarray(wp4), np.asarray(ref4),
                               rtol=1e-5, atol=1e-6)

    # 5) bf16 I/O computes in bf16; compare against the f32 reference loosely.
    w_bf = w2d.astype(jnp.bfloat16)
    wp5 = jax.block_until_ready(
        truncation_forward(w_bf, w_avg, num_layers=L, w_space_dim=D,
                           repeat_w=True, trunc_psi=0.7, trunc_layers=4))
    np.testing.assert_allclose(np.asarray(wp5.astype(jnp.float32)),
                               np.asarray(ref), rtol=0.02, atol=0.06)

    print("KERNEL_OK")
</pallas_src>

<mosaic_0001>
module attributes {stable_mosaic.version = 11 : i64} {
  func.func @_repeat_trunc_kernel(%arg0: i32, %arg1: memref<2x128xf32, #tpu.memory_space<vmem>>, %arg2: memref<8x128xf32, #tpu.memory_space<vmem>>, %arg3: memref<8x128xf32, #tpu.memory_space<vmem>>, %arg4: memref<2x8x128xf32, #tpu.memory_space<vmem>>) attributes {dimension_semantics = [#tpu.dimension_semantics<parallel>], iteration_bounds = array<i64: 1>, scalar_prefetch = 0 : i64, scratch_operands = 0 : i64, tpu.core_type = #tpu.core_type<tc>, window_params = [{transform_indices = @transform_0, window_bounds = array<i64: 2, 128>}, {pipeline_mode = #tpu.pipeline_mode<synchronous>, transform_indices = @transform_1, window_bounds = array<i64: 8, 128>}, {pipeline_mode = #tpu.pipeline_mode<synchronous>, transform_indices = @transform_2, window_bounds = array<i64: 8, 128>}, {transform_indices = @transform_3, window_bounds = array<i64: 2, 8, 128>}]} {
    %c0 = arith.constant 0 : index
    %c0_0 = arith.constant 0 : index
    %0 = vector.load %arg1[%c0, %c0_0] : memref<2x128xf32, #tpu.memory_space<vmem>>, vector<2x128xf32>
    %c0_1 = arith.constant 0 : index
    %c0_2 = arith.constant 0 : index
    %1 = vector.load %arg2[%c0_1, %c0_2] : memref<8x128xf32, #tpu.memory_space<vmem>>, vector<8x128xf32>
    %2 = vector.shape_cast %1 : vector<8x128xf32> to vector<1x8x128xf32>
    %c0_3 = arith.constant 0 : index
    %c0_4 = arith.constant 0 : index
    %3 = vector.load %arg3[%c0_3, %c0_4] : memref<8x128xf32, #tpu.memory_space<vmem>>, vector<8x128xf32>
    %4 = vector.shape_cast %3 : vector<8x128xf32> to vector<1x8x128xf32>
    %5 = vector.shape_cast %0 : vector<2x128xf32> to vector<2x1x128xf32>
    %6 = vector.broadcast %5 : vector<2x1x128xf32> to vector<2x8x128xf32>
    %7 = vector.broadcast %2 : vector<1x8x128xf32> to vector<2x8x128xf32>
    %8 = arith.mulf %6, %7 : vector<2x8x128xf32>
    %9 = vector.broadcast %4 : vector<1x8x128xf32> to vector<2x8x128xf32>
    %10 = arith.addf %8, %9 : vector<2x8x128xf32>
    %c0_5 = arith.constant 0 : index
    %c0_6 = arith.constant 0 : index
    %c0_7 = arith.constant 0 : index
    %11 = vector.load %arg4[%c0_5, %c0_6, %c0_7] : memref<2x8x128xf32, #tpu.memory_space<vmem>>, vector<2x8x128xf32>
    tpu.vector_store %arg4[%c0_5, %c0_6, %c0_7], %10 {strides = array<i32>} : memref<2x8x128xf32, #tpu.memory_space<vmem>>, vector<2x8x128xf32>,
    return
  }
  func.func @transform_0(%arg0: i32) -> (i32, i32) {
    %c0_i32 = arith.constant 0 : i32
    %c0_i32_0 = arith.constant 0 : i32
    return %arg0, %c0_i32 : i32, i32
  }
  func.func @transform_1(%arg0: i32) -> (i32, i32) {
    %c0_i32 = arith.constant 0 : i32
    %c0_i32_0 = arith.constant 0 : i32
    %c0_i32_1 = arith.constant 0 : i32
    return %c0_i32, %c0_i32_0 : i32, i32
  }
  func.func @transform_2(%arg0: i32) -> (i32, i32) {
    %c0_i32 = arith.constant 0 : i32
    %c0_i32_0 = arith.constant 0 : i32
    %c0_i32_1 = arith.constant 0 : i32
    return %c0_i32, %c0_i32_0 : i32, i32
  }
  func.func @transform_3(%arg0: i32) -> (i32, i32, i32) {
    %c0_i32 = arith.constant 0 : i32
    %c0_i32_0 = arith.constant 0 : i32
    %c0_i32_1 = arith.constant 0 : i32
    return %arg0, %c0_i32, %c0_i32_0 : i32, i32, i32
  }
}

</mosaic_0001>

<bundles_post_ra>
// kernel: tpu_custom_call.1
= control target key start
LH: loop header
LB: loop body
LE: loop exit
PB: predicated region body
PF: predicated region fallthrough
CT: control target
= control target key end

     0   :  { %8 = vsyncpa [#allocation3], 0  ;;  %s287_s0 = inlined_call_operand.hbm [shape: f32[2,128], index: 0, kind: input, shape index: {}]   ;;  %s288_s1 = inlined_call_operand.hbm [shape: f32[8,128], index: 1, kind: input, shape index: {}]   ;;  %s289_s2 = inlined_call_operand.hbm [shape: f32[8,128], index: 2, kind: input, shape index: {}]   ;;  %s290_s3 = inlined_call_operand.hbm [shape: f32[2,8,128], index: 3, kind: output, shape index: {}]  }
   0x1   :  { %9 = vsyncpa [#allocation6], 0 }
   0x2   :  { %10 = vsyncpa [#allocation4], 0  ;;  %s212_s12 = smov [#allocation5]   ;;  %s213_s14 = smov [#allocation2]  }
   0x3   :  { %s27_s13 = sshll.u32 %s212_s12, 4  ;;  %s17_s15 = sshll.u32 %s213_s14, 4  ;;  %s28_s13 = int_to_ptr.vmem [resolvable:$true] %s27_s13  ;;  %s18_s15 = int_to_ptr.vmem [resolvable:$true] %s17_s15 }
   0x4   :  { %s118_s18 = scalar_lea.hbm %s288_s1, 128 }
   0x5   :  { %p119_p0 = scmp.ne.s32.totalorder %s288_s1, %s118_s18  ;;  %p122_p1 = scmp.lt.u32.totalorder %s118_s18, %s288_s1 }
   0x7   :  { %p124_p2 = pnand %p122_p1, %p119_p0 }
   0x9   :  { %127 = shalt.err (!%p124_p2)
}
   0xa   :  { %s128_s23 = scalar_lea.vmem %s28_s13, 128  ;;  %p133_p4 = scmp.lt.s32.totalorder %s28_s13, %s28_s13 }
   0xb   :  { %p129_p3 = scmp.ne.s32.totalorder %s28_s13, %s128_s23  ;;  %p134_p5 = scmp.lt.s32.totalorder %s128_s23, %s128_s23 }
   0xd   :  { %p135_p6 = por %p134_p5, %p133_p4 }
   0xf   :  { %p136_p7 = pnand %p135_p6, %p129_p3 }
  0x11   :  { %139 = shalt.err (!%p136_p7)
}
  0x12   :  { %30 = dma.hbm_to_vmem [thread:$0]  %s288_s1, 128, %s28_s13, [#allocation6]  }
  0x13   :  { %s140_s28 = scalar_lea.hbm %s287_s0, 32 }
  0x14   :  { %p141_p8 = scmp.ne.s32.totalorder %s287_s0, %s140_s28  ;;  %p144_p9 = scmp.lt.u32.totalorder %s140_s28, %s287_s0 }
  0x16   :  { %p146_p10 = pnand %p144_p9, %p141_p8 }
  0x18   :  { %149 = shalt.err (!%p146_p10)
}
  0x19   :  { %s150_s6 = scalar_lea.vmem %s18_s15, 32  ;;  %p155_p12 = scmp.lt.s32.totalorder %s18_s15, %s18_s15 }
  0x1a   :  { %p151_p11 = scmp.ne.s32.totalorder %s18_s15, %s150_s6  ;;  %p156_p13 = scmp.lt.s32.totalorder %s150_s6, %s150_s6 }
  0x1c   :  { %p157_p0 = por %p156_p13, %p155_p12 }
  0x1e   :  { %p158_p1 = pnand %p157_p0, %p151_p11 }
  0x20   :  { %161 = shalt.err (!%p158_p1)
}
  0x21   :  { %20 = dma.hbm_to_vmem [thread:$0]  %s287_s0, 32, %s18_s15, [#allocation3]  }
  0x22   :  { %s214_s8 = smov [#allocation7]   ;;  %s162_s12 = scalar_lea.hbm %s289_s2, 128 }
  0x23   :  { %s37_s9 = sshll.u32 %s214_s8, 4  ;;  %p163_p2 = scmp.ne.s32.totalorder %s289_s2, %s162_s12  ;;  %s38_s9 = int_to_ptr.vmem [resolvable:$true] %s37_s9 }
  0x24   :  { %p166_p3 = scmp.lt.u32.totalorder %s162_s12, %s289_s2 }
  0x26   :  { %p168_p4 = pnand %p166_p3, %p163_p2 }
  0x28   :  { %171 = shalt.err (!%p168_p4)
}
  0x29   :  { %s172_s18 = scalar_lea.vmem %s38_s9, 128  ;;  %p177_p6 = scmp.lt.s32.totalorder %s38_s9, %s38_s9 }
  0x2a   :  { %p173_p5 = scmp.ne.s32.totalorder %s38_s9, %s172_s18  ;;  %p178_p7 = scmp.lt.s32.totalorder %s172_s18, %s172_s18 }
  0x2c   :  { %p179_p8 = por %p178_p7, %p177_p6 }
  0x2e   :  { %p180_p9 = pnand %p179_p8, %p173_p5 }
  0x30   :  { %183 = shalt.err (!%p180_p9)
}
  0x31   :  { %40 = dma.hbm_to_vmem [thread:$0]  %s289_s2, 128, %s38_s9, [#allocation6]  }
  0x32   :  { %206 = dma.done.wait [#allocation3], 32  }
  0x33   :  { %207 = vsyncadd [#allocation3], 4294967264 }
  0x34   :  { %208 = dma.done.wait [#allocation6], 256  }
  0x35   :  { %209 = vsyncadd [#allocation6], 4294967040  ;;  %v65_v0 = vlaneseq  ;;  %v215_v1 = vmov 1966171168   ;;  %v51_v10 = vld [vmem:[#allocation5] sm:$0xff]  ;;  %v52_v13 = vld [vmem:[#allocation7] sm:$0xff] }
  0x36   :  { %v63_v2 = vunpack.c.l.s4 %v215_v1  ;;  %v110_v7 = vld.sshfl [vmem:[#allocation2] sm:$0x11 pattern:$0x75316420]  ;;  %s216_s2 = smov [#allocation8]  }
  0x37   :  { %v66_v3 = vshrl.u32 %v65_v0, 7  ;;  %v61_v9 = vcombine.high %v110_v7, %v110_v7  ;;  %s97_s19 = sshll.u32 %s216_s2, 4  ;;  %s98_s19 = int_to_ptr.vmem [resolvable:$true] %s97_s19 }
  0x38   :  { %v64_v4 = vunpack.c.0.s8 %v63_v2  ;;  %s184_s20 = scalar_lea.vmem %s98_s19, 256  ;;  %p189_p11 = scmp.lt.s32.totalorder %s98_s19, %s98_s19 }
  0x39   :  { %v78_v6 = vsub.s32 0, %v66_v3  ;;  %p185_p10 = scmp.ne.s32.totalorder %s98_s19, %s184_s20  ;;  %p190_p12 = scmp.lt.s32.totalorder %s184_s20, %s184_s20 }
  0x3a   :  { %v67_v5 = vsub.s32 %v64_v4, %v66_v3 }
  0x3b   :  { %p191_p13 = por %p190_p12, %p189_p11 }
  0x3c   :  { %v68_v8 = vrot.slane %v110_v7, %v67_v5  ;;  %v75_v12 = vrot.slane %v61_v9, %v67_v5 }
  0x3d   :  { %p192_p0 = pnand %p191_p13, %p185_p10 }
  0x3e   :  { %v79_v11 = vrot.slane %v68_v8, %v78_v6  ;;  %v83_v15 = vrot.slane %v75_v12, %v78_v6 }
  0x40   :  { %v86_v14 = vmul.f32 %v79_v11, %v51_v10  ;;  %v87_v17 = vmul.f32 %v83_v15, %v51_v10 }
  0x42   :  { %v88_v16 = vadd.f32 %v86_v14, %v52_v13  ;;  %v89_v18 = vadd.f32 %v87_v17, %v52_v13 }
  0x44   :  { %90 = vst [vmem:[#allocation8] sm:$0xff] %v88_v16  ;;  %91 = vst [vmem:[#allocation8 + $0x8] sm:$0xff] %v89_v18 }
  0x45   :  { %195 = shalt.err (!%p192_p0)
}
  0x46   :  { %s196_s23 = scalar_lea.hbm %s290_s3, 256 }
  0x47   :  { %p197_p1 = scmp.ne.s32.totalorder %s290_s3, %s196_s23  ;;  %p200_p2 = scmp.lt.u32.totalorder %s196_s23, %s290_s3 }
  0x49   :  { %p202_p3 = pnand %p200_p2, %p197_p1 }
  0x4b   :  { %205 = shalt.err (!%p202_p3)
}
  0x4c   :  { %s217_s28 = smov 128   ;;  %s218_s29 = smov 8  }
  0x4d   :  { %103 = dma.vmem_to_hbm [thread:$0]  %s98_s19, 256, %s290_s3, [#allocation4], %s217_s28, %s217_s28, %s218_s29  }
  0x4e   :  { %210 = dma.done.wait [#allocation4], 256  }
  0x4f   :  { %211 = vsyncadd [#allocation4], 4294967040 }
  0x50   :  { %107 = vsyncpa [#allocation3], 1 }
  0x51   :  { %108 = vsyncpa [#allocation6], 1 }
  0x52   :  { %109 = vsyncpa [#allocation4], 1 }

</bundles_post_ra>
